<compile_context>
chip_gen: v7x
topology: tpu7x:2x2x1
jax: 0.10.0
libtpu: 0.0.40
codegen_flags: <defaults>
</compile_context>

<pallas_src>
import functools
import math

import jax
import jax.numpy as jnp
from jax.experimental import pallas as pl
from jax.experimental.pallas import tpu as pltpu


def _rms_kernel(x_ref, mean_ref, scale_ref, o_ref, *, subtract_mean, clip, bound):
    # x_ref: (tile_b, block_d) in native dtype; mean/scale: (1, block_d) f32.
    x = x_ref[...].astype(jnp.float32)
    if subtract_mean:
        y = (x - mean_ref[...]) * scale_ref[...]
    else:
        y = x * scale_ref[...]
    if clip:
        y = jnp.clip(y, -bound, bound)
    o_ref[...] = y.astype(o_ref.dtype)


_DEFAULT_BLOCK_BYTES = 4 * 1024 * 1024   # >=85% of HBM roofline on v5e/v6e
_SMALL_ARRAY_BYTES = 1 * 1024 * 1024     # below this, a single block is fine


def _block_budget():
    """Per-block byte budget + optional scoped-VMEM override, per generation."""
    block_bytes = _DEFAULT_BLOCK_BYTES
    vmem_limit = None
    try:
        info = pltpu.get_tpu_info()
        vmem_cap = getattr(info, "vmem_capacity_bytes", None)
        if vmem_cap is not None and vmem_cap <= 80 * 1024 * 1024:
            # v7x-class: 64 MiB VMEM but ~3.2 TB/s HBM per TC. Bigger blocks
            # amortize the ~0.35us per-grid-step overhead; raise scoped VMEM so
            # double-buffered in+out (~4 * block) still fits comfortably.
            block_bytes = 8 * 1024 * 1024
            vmem_limit = 48 * 1024 * 1024
    except Exception:
        pass  # conservative defaults if hardware query is unavailable
    return block_bytes, vmem_limit


def _sublane(itemsize):
    # Rows per sublane-packed vreg: 8 for 32-bit, 16 for 16-bit, 32 for 8-bit.
    return {4: 8, 2: 16, 1: 32}.get(itemsize, 8)


def running_mean_std_forward(x, mean, std, *, eps=1e-5, subtract_mean=True,
                             clip=False, bound=10.0, donate_x=False):
    """Pallas implementation of RunningMeanStd.forward.

    x: (..., D) array (any leading dims); mean, std: (D,).
    Returns an array of the same shape and dtype as x.
    """
    orig_shape = x.shape
    D = orig_shape[-1]
    assert mean.shape == (D,) and std.shape == (D,), (
        f"got shape={orig_shape} but expected trailing dim {mean.shape}")

    x2 = x.reshape(-1, D)
    B = x2.shape[0]

    # Precompute f32 normalization constants on the tiny (D,) vectors.
    mean_f = mean.astype(jnp.float32)
    scale_f = 1.0 / (std.astype(jnp.float32) + jnp.float32(eps))

    # Lane-dense packing: fold k feature rows into one so the last dim is a
    # multiple of 128 lanes (full-width vst instead of masked partial stores).
    # Pure reshape -> no data movement; only taken when B divides evenly so no
    # pad copies are ever introduced.
    k = 1
    if B > 0 and D % 128 != 0:
        kk = 128 // math.gcd(D, 128)
        if kk > 1 and B % kk == 0:
            k = kk
    Bp = B // k
    De = D * k
    if k > 1:
        x2 = x2.reshape(Bp, De)
        mean_f = jnp.tile(mean_f, k)
        scale_f = jnp.tile(scale_f, k)
    mean2d = mean_f.reshape(1, De)
    scale2d = scale_f.reshape(1, De)

    itemsize = jnp.dtype(x2.dtype).itemsize
    sub = _sublane(itemsize)
    block_bytes, vmem_limit = _block_budget()
    total_bytes = Bp * De * itemsize

    # Feature-axis blocking only if even a minimal-height, full-width block
    # would exceed the budget (huge D); otherwise keep the full feature width.
    if De <= 128 or De * sub * itemsize <= block_bytes:
        block_d = De
    else:
        block_d = max(128, (block_bytes // (sub * itemsize)) // 128 * 128)
        block_d = min(block_d, (De // 128) * 128)
    grid_d = pl.cdiv(De, block_d)

    # Row tile: fill the budget, but keep >= ~4 batch blocks for larger arrays
    # so v7x's two TensorCores both get work and DMA in/out overlaps compute.
    rows_cap = max(sub, (block_bytes // max(1, block_d * itemsize)) // sub * sub)
    if total_bytes <= _SMALL_ARRAY_BYTES and block_d == De and Bp <= rows_cap:
        tile_b = Bp                       # tiny array: one block (overhead-bound)
    else:
        target = -(-Bp // 4)              # ceil(Bp / 4)
        target = -(-target // sub) * sub  # round up to a sublane multiple
        tile_b = max(sub, min(rows_cap, target))
        if tile_b >= Bp:
            tile_b = Bp                   # block equals full dim -> always legal
        else:
            # Prefer a divisor of Bp (no ragged tail), but only within ~25% of
            # the budgeted tile; otherwise keep the ragged tail (Pallas masks
            # the edge block's out-of-bounds stores, no pad/slice copies).
            floor_t = max(sub, ((3 * tile_b) // 4) // sub * sub)
            t = tile_b
            while t >= floor_t:
                if Bp % t == 0:
                    tile_b = t
                    break
                t -= sub
    grid_b = pl.cdiv(Bp, tile_b)

    kernel = functools.partial(
        _rms_kernel, subtract_mean=subtract_mean, clip=clip, bound=float(bound))

    nelems = Bp * De
    cost = pl.CostEstimate(
        flops=(4 if clip else 2) * nelems,
        transcendentals=0,
        bytes_accessed=2 * nelems * itemsize + 2 * De * 4)

    cp_kwargs = dict(dimension_semantics=("parallel", "parallel"))
    if vmem_limit is not None:
        cp_kwargs["vmem_limit_bytes"] = vmem_limit

    out = pl.pallas_call(
        kernel,
        out_shape=jax.ShapeDtypeStruct((Bp, De), x2.dtype),
        grid=(grid_b, grid_d),
        in_specs=[
            pl.BlockSpec((tile_b, block_d), lambda i, j: (i, j)),   # x rows
            pl.BlockSpec((1, block_d), lambda i, j: (0, j)),        # mean row
            pl.BlockSpec((1, block_d), lambda i, j: (0, j)),        # 1/(std+eps)
        ],
        out_specs=pl.BlockSpec((tile_b, block_d), lambda i, j: (i, j)),
        compiler_params=pltpu.CompilerParams(**cp_kwargs),
        cost_estimate=cost,
        input_output_aliases=({0: 0} if donate_x else {}),
    )(x2, mean2d, scale2d)

    if k > 1:
        out = out.reshape(B, D)
    return out.reshape(orig_shape)


if __name__ == "__main__":
    key = jax.random.PRNGKey(0)
    kx, km, ks, kx2, kx3 = jax.random.split(key, 5)
    eps = 1e-5

    # --- Main test: matches RunningMeanStd(shape=(D,)) defaults (eps=1e-5, bound=10).
    B, D = 16, 32
    x = jax.random.normal(kx, (B, D), dtype=jnp.float32) * 3.0
    mean = jax.random.normal(km, (D,), dtype=jnp.float32) * 0.5
    std = jax.random.uniform(ks, (D,), dtype=jnp.float32, minval=0.5, maxval=2.0)

    ref = (x - mean[None, :]) / (std[None, :] + eps)

    y = jax.block_until_ready(
        running_mean_std_forward(x, mean, std, eps=eps, subtract_mean=True))
    y_clip = jax.block_until_ready(
        running_mean_std_forward(x, mean, std, eps=eps, subtract_mean=True, clip=True))
    y_nomean = jax.block_until_ready(
        running_mean_std_forward(x, mean, std, eps=eps, subtract_mean=False))

    assert jnp.allclose(y, ref, atol=1e-5, rtol=1e-5)
    assert jnp.allclose(y_clip, jnp.clip(ref, -10.0, 10.0), atol=1e-5, rtol=1e-5)
    assert jnp.allclose(y_nomean, x / (std[None, :] + eps), atol=1e-5, rtol=1e-5)

    # --- Leading dims + no-packing fallback (B=10 not a multiple of k=4, D<128).
    x_ld = jax.random.normal(kx2, (2, 5, D), dtype=jnp.float32)
    y_ld = jax.block_until_ready(
        running_mean_std_forward(x_ld, mean, std, eps=eps, subtract_mean=True))
    ref_ld = (x_ld - mean) / (std + eps)
    assert jnp.allclose(y_ld, ref_ld, atol=1e-5, rtol=1e-5)

    # --- Multi-block path (array > 1 MiB -> >=4 batch blocks, D=128 lane-dense).
    B2, D2 = 4096, 128
    x_big = jax.random.normal(kx3, (B2, D2), dtype=jnp.float32)
    mean_big = jnp.linspace(-0.5, 0.5, D2, dtype=jnp.float32)
    std_big = jnp.linspace(0.5, 2.0, D2, dtype=jnp.float32)
    y_big = jax.block_until_ready(
        running_mean_std_forward(x_big, mean_big, std_big, eps=eps,
                                 subtract_mean=True, clip=True))
    ref_big = jnp.clip((x_big - mean_big) / (std_big + eps), -10.0, 10.0)
    assert jnp.allclose(y_big, ref_big, atol=1e-5, rtol=1e-5)

    # --- bf16 streaming path (f32 compute in-kernel, sublane pack of 16).
    x_bf = (jax.random.normal(kx, (16, 64), dtype=jnp.float32)).astype(jnp.bfloat16)
    mean_bf = jnp.zeros((64,), jnp.float32)
    std_bf = jnp.ones((64,), jnp.float32)
    y_bf = jax.block_until_ready(
        running_mean_std_forward(x_bf, mean_bf, std_bf, eps=eps, subtract_mean=True))
    ref_bf = ((x_bf.astype(jnp.float32) - mean_bf) / (std_bf + eps)).astype(jnp.bfloat16)
    assert jnp.allclose(y_bf.astype(jnp.float32), ref_bf.astype(jnp.float32),
                        atol=2e-2, rtol=2e-2)

    print("KERNEL_OK")
</pallas_src>

<mosaic_0001>
module attributes {stable_mosaic.version = 11 : i64} {
  func.func @_rms_kernel(%arg0: i32, %arg1: i32, %arg2: memref<4x128xf32, #tpu.memory_space<vmem>>, %arg3: memref<1x128xf32, #tpu.memory_space<vmem>>, %arg4: memref<1x128xf32, #tpu.memory_space<vmem>>, %arg5: memref<4x128xf32, #tpu.memory_space<vmem>>) attributes {dimension_semantics = [#tpu.dimension_semantics<parallel>, #tpu.dimension_semantics<parallel>], iteration_bounds = array<i64: 1, 1>, scalar_prefetch = 0 : i64, scratch_operands = 0 : i64, tpu.core_type = #tpu.core_type<tc>, window_params = [{transform_indices = @transform_0, window_bounds = array<i64: 4, 128>}, {transform_indices = @transform_1, window_bounds = array<i64: 1, 128>}, {transform_indices = @transform_2, window_bounds = array<i64: 1, 128>}, {transform_indices = @transform_3, window_bounds = array<i64: 4, 128>}]} {
    %c0 = arith.constant 0 : index
    %c0_0 = arith.constant 0 : index
    %0 = vector.load %arg2[%c0, %c0_0] : memref<4x128xf32, #tpu.memory_space<vmem>>, vector<4x128xf32>
    %c0_1 = arith.constant 0 : index
    %c0_2 = arith.constant 0 : index
    %1 = vector.load %arg3[%c0_1, %c0_2] : memref<1x128xf32, #tpu.memory_space<vmem>>, vector<1x128xf32>
    %2 = vector.broadcast %1 : vector<1x128xf32> to vector<4x128xf32>
    %3 = arith.subf %0, %2 : vector<4x128xf32>
    %c0_3 = arith.constant 0 : index
    %c0_4 = arith.constant 0 : index
    %4 = vector.load %arg4[%c0_3, %c0_4] : memref<1x128xf32, #tpu.memory_space<vmem>>, vector<1x128xf32>
    %5 = vector.broadcast %4 : vector<1x128xf32> to vector<4x128xf32>
    %6 = arith.mulf %3, %5 : vector<4x128xf32>
    %c0_5 = arith.constant 0 : index
    %c0_6 = arith.constant 0 : index
    %7 = vector.load %arg5[%c0_5, %c0_6] : memref<4x128xf32, #tpu.memory_space<vmem>>, vector<4x128xf32>
    tpu.vector_store %arg5[%c0_5, %c0_6], %6 {strides = array<i32>} : memref<4x128xf32, #tpu.memory_space<vmem>>, vector<4x128xf32>,
    return
  }
  func.func @transform_0(%arg0: i32, %arg1: i32) -> (i32, i32) {
    %c0_i32 = arith.constant 0 : i32
    return %arg0, %arg1 : i32, i32
  }
  func.func @transform_1(%arg0: i32, %arg1: i32) -> (i32, i32) {
    %c0_i32 = arith.constant 0 : i32
    %c0_i32_0 = arith.constant 0 : i32
    return %c0_i32, %arg1 : i32, i32
  }
  func.func @transform_2(%arg0: i32, %arg1: i32) -> (i32, i32) {
    %c0_i32 = arith.constant 0 : i32
    %c0_i32_0 = arith.constant 0 : i32
    return %c0_i32, %arg1 : i32, i32
  }
  func.func @transform_3(%arg0: i32, %arg1: i32) -> (i32, i32) {
    %c0_i32 = arith.constant 0 : i32
    return %arg0, %arg1 : i32, i32
  }
}

</mosaic_0001>

<bundles_post_ra>
// kernel: tpu_custom_call.1
= control target key start
LH: loop header
LB: loop body
LE: loop exit
PB: predicated region body
PF: predicated region fallthrough
CT: control target
= control target key end

     0   :  { %8 = vsyncpa [#allocation3], 0  ;;  %s164_s0 = inlined_call_operand.hbm [shape: f32[4,128], index: 0, kind: input, shape index: {}]   ;;  %s165_s1 = inlined_call_operand.vmem [shape: f32[1,128], index: 1, kind: input, shape index: {}]   ;;  %s166_s2 = inlined_call_operand.vmem [shape: f32[1,128], index: 2, kind: input, shape index: {}]   ;;  %s167_s3 = inlined_call_operand.hbm [shape: f32[4,128], index: 3, kind: output, shape index: {}]  }
   0x1   :  { %9 = vsyncpa [#allocation4], 0  ;;  %s112_s12 = smov [#allocation2]   ;;  %s64_s16 = scalar_lea.hbm %s164_s0, 64 }
   0x2   :  { %s16_s13 = sshll.u32 %s112_s12, 4  ;;  %p65_p0 = scmp.ne.s32.totalorder %s164_s0, %s64_s16  ;;  %s17_s13 = int_to_ptr.vmem [resolvable:$true] %s16_s13 }
   0x3   :  { %p68_p1 = scmp.lt.u32.totalorder %s64_s16, %s164_s0 }
   0x5   :  { %p70_p2 = pnand %p68_p1, %p65_p0 }
   0x7   :  { %73 = shalt.err (!%p70_p2)
}
   0x8   :  { %s74_s21 = scalar_lea.vmem %s17_s13, 64  ;;  %p79_p4 = scmp.lt.s32.totalorder %s17_s13, %s17_s13 }
   0x9   :  { %p75_p3 = scmp.ne.s32.totalorder %s17_s13, %s74_s21  ;;  %p80_p5 = scmp.lt.s32.totalorder %s74_s21, %s74_s21 }
   0xb   :  { %p81_p6 = por %p80_p5, %p79_p4 }
   0xd   :  { %p82_p7 = pnand %p81_p6, %p75_p3 }
   0xf   :  { %85 = shalt.err (!%p82_p7)
}
  0x10   :  { %19 = dma.hbm_to_vmem [thread:$0]  %s164_s0, 64, %s17_s13, [#allocation3]  }
  0x11   :  { %108 = dma.done.wait [#allocation3], 64  }
  0x12   :  { %109 = vsyncadd [#allocation3], 4294967232  ;;  %s113_s24 = smov [#allocation5]   ;;  %v27_v0 = vld [vmem:[#allocation2] sm:$0xf] }
  0x13   :  { %s51_s25 = sshll.u32 %s113_s24, 4  ;;  %v60_v1 = vld [vmem:[%s165_s1] ss:$0 sm:$0xff]  ;;  %s52_s25 = int_to_ptr.vmem [resolvable:$true] %s51_s25 }
  0x14   :  { %v61_v2 = vld [vmem:[%s166_s2] ss:$0 sm:$0xff]  ;;  %v35_v3 = vsub.f32 %v27_v0, %v60_v1  ;;  %s86_s30 = scalar_lea.vmem %s52_s25, 64  ;;  %p91_p9 = scmp.lt.s32.totalorder %s52_s25, %s52_s25 }
  0x15   :  { %p87_p8 = scmp.ne.s32.totalorder %s52_s25, %s86_s30  ;;  %p92_p10 = scmp.lt.s32.totalorder %s86_s30, %s86_s30 }
  0x16   :  { %v43_v4 = vmul.f32 %v61_v2, %v35_v3 }
  0x17   :  { %p93_p11 = por %p92_p10, %p91_p9 }
  0x18   :  { %44 = vst [vmem:[#allocation5] sm:$0xf] %v43_v4 }
  0x19   :  { %p94_p12 = pnand %p93_p11, %p87_p8 }
  0x1b   :  { %97 = shalt.err (!%p94_p12)
}
  0x1c   :  { %s98_s5 = scalar_lea.hbm %s167_s3, 64 }
  0x1d   :  { %p99_p13 = scmp.ne.s32.totalorder %s167_s3, %s98_s5  ;;  %p102_p0 = scmp.lt.u32.totalorder %s98_s5, %s167_s3 }
  0x1f   :  { %p104_p1 = pnand %p102_p0, %p99_p13 }
  0x21   :  { %107 = shalt.err (!%p104_p1)
}
  0x22   :  { %54 = dma.vmem_to_hbm [thread:$0]  %s52_s25, 64, %s167_s3, [#allocation4]  }
  0x23   :  { %110 = dma.done.wait [#allocation4], 64  }
  0x24   :  { %111 = vsyncadd [#allocation4], 4294967232 }
  0x25   :  { %58 = vsyncpa [#allocation3], 1 }
  0x26   :  { %59 = vsyncpa [#allocation4], 1 }

</bundles_post_ra>
